<compile_context>
chip_gen: v5e
topology: v5e:2x2
jax: 0.10.0
libtpu: 0.0.40
codegen_flags: <defaults>
</compile_context>

<pallas_src>
import math

import jax
import jax.numpy as jnp
from jax.experimental import pallas as pl
from jax.experimental.pallas import tpu as pltpu

_LANE_CANDIDATES = (1024, 512, 256, 128)   # all multiples of 128 (unmasked stores)
_SUBLANES = 8                              # f32 sublane granularity
_TILE_BYTES_PER_STREAM = 2 * 1024 * 1024   # 2 MiB tile per operand stream


def _patch_apply_kernel(img_ref, patch_ref, mask_ref, out_ref):
    img = img_ref[...]
    patch = patch_ref[...]
    mask_tf = mask_ref[...]
    # Exact formula of the PyTorch module: img * (1 - mask) + patch * mask.
    # VPU ops are free filler in this HBM-bound kernel; keep bit-faithful math.
    one = jnp.asarray(1.0, img.dtype)
    out_ref[...] = img * (one - mask_tf) + patch * mask_tf


def _choose_layout(total):
    """Pick the widest lane dim whose row count is a multiple of 8 w/o padding."""
    for lanes in _LANE_CANDIDATES:
        if total % (lanes * _SUBLANES) == 0:
            return lanes, 0
    # Fallback: pad (whole-array copy) up to a multiple of 8*1024 elements.
    lanes = _LANE_CANDIDATES[0]
    chunk = lanes * _SUBLANES
    padded = -(-total // chunk) * chunk
    return lanes, padded - total


def patch_applier(img_batch, patch, patch_mask_tf):
    """Elementwise blend: img * (1 - mask) + patch * mask (any shape, NCHW here)."""
    assert patch.shape == img_batch.shape
    assert patch_mask_tf.shape == img_batch.shape

    orig_shape = img_batch.shape
    dtype = img_batch.dtype
    total = math.prod(orig_shape)

    lanes, pad = _choose_layout(total)
    padded_total = total + pad
    rows = padded_total // lanes                      # always a multiple of 8

    elem_bytes = jnp.dtype(dtype).itemsize
    target_rows = max(
        _SUBLANES,
        (_TILE_BYTES_PER_STREAM // (elem_bytes * lanes)) // _SUBLANES * _SUBLANES,
    )
    tile_rows = min(rows, target_rows)                # multiple of 8 by construction

    def _flat(x):
        # Contiguous row-major reshape (free); pad only in the rare fallback.
        x = x.astype(dtype).reshape(-1)
        if pad:
            x = jnp.pad(x, (0, pad))
        return x.reshape(rows, lanes)

    img2 = _flat(img_batch)
    patch2 = _flat(patch)
    # Mask kept in the image dtype (not int8) to preserve exact multiply
    # semantics of the original module for non-binary masks.
    mask2 = _flat(patch_mask_tf)

    grid = (-(-rows // tile_rows),)                   # cdiv; partial last block is masked
    spec = pl.BlockSpec((tile_rows, lanes), lambda i: (i, 0))

    out2 = pl.pallas_call(
        _patch_apply_kernel,
        out_shape=jax.ShapeDtypeStruct((rows, lanes), dtype),
        grid_spec=pltpu.PrefetchScalarGridSpec(
            num_scalar_prefetch=0,
            grid=grid,
            in_specs=[spec, spec, spec],
            out_specs=spec,
        ),
        compiler_params=pltpu.CompilerParams(
            # Single independent axis -> megacore can shard tiles across TCs (v7x).
            dimension_semantics=("parallel",),
            # 4 streams x 2 buffers x 2 MiB ~= 16 MiB actual use; 48 MiB cap
            # leaves headroom on v5e/v6e (128 MiB) and v7x (64 MiB) physical VMEM.
            vmem_limit_bytes=48 * 1024 * 1024,
        ),
    )(img2, patch2, mask2)

    out = out2.reshape(-1)
    if pad:
        out = out[:total]
    return out.reshape(orig_shape)


if __name__ == "__main__":
    key = jax.random.PRNGKey(0)
    k_img, k_patch, k_mask = jax.random.split(key, 3)

    B, C, H, W = 2, 4, 16, 16
    img_batch = jax.random.uniform(k_img, (B, C, H, W), dtype=jnp.float32)
    patch = jax.random.uniform(k_patch, (B, C, H, W), dtype=jnp.float32)
    # binary {0,1} mask, like a TF-rendered patch mask
    patch_mask_tf = (
        jax.random.uniform(k_mask, (B, C, H, W)) > 0.5
    ).astype(jnp.float32)

    out = patch_applier(img_batch, patch, patch_mask_tf)
    jax.block_until_ready(out)

    # reference check in plain JAX (same formula as the PyTorch module)
    ref = img_batch * (1.0 - patch_mask_tf) + patch * patch_mask_tf
    assert out.shape == img_batch.shape
    assert jnp.allclose(out, ref, atol=1e-6), "mismatch vs reference"

    print("KERNEL_OK")
</pallas_src>

<mosaic_0001>
module attributes {stable_mosaic.version = 11 : i64} {
  func.func @_patch_apply_kernel(%arg0: i32, %arg1: memref<8x256xf32, #tpu.memory_space<vmem>>, %arg2: memref<8x256xf32, #tpu.memory_space<vmem>>, %arg3: memref<8x256xf32, #tpu.memory_space<vmem>>, %arg4: memref<8x256xf32, #tpu.memory_space<vmem>>) attributes {dimension_semantics = [#tpu.dimension_semantics<parallel>], iteration_bounds = array<i64: 1>, scalar_prefetch = 0 : i64, scratch_operands = 0 : i64, tpu.core_type = #tpu.core_type<tc>, window_params = [{transform_indices = @transform_0, window_bounds = array<i64: 8, 256>}, {transform_indices = @transform_1, window_bounds = array<i64: 8, 256>}, {transform_indices = @transform_2, window_bounds = array<i64: 8, 256>}, {transform_indices = @transform_3, window_bounds = array<i64: 8, 256>}]} {
    %c0 = arith.constant 0 : index
    %c0_0 = arith.constant 0 : index
    %0 = vector.load %arg1[%c0, %c0_0] : memref<8x256xf32, #tpu.memory_space<vmem>>, vector<8x256xf32>
    %c0_1 = arith.constant 0 : index
    %c0_2 = arith.constant 0 : index
    %1 = vector.load %arg2[%c0_1, %c0_2] : memref<8x256xf32, #tpu.memory_space<vmem>>, vector<8x256xf32>
    %c0_3 = arith.constant 0 : index
    %c0_4 = arith.constant 0 : index
    %2 = vector.load %arg3[%c0_3, %c0_4] : memref<8x256xf32, #tpu.memory_space<vmem>>, vector<8x256xf32>
    %cst = arith.constant 1.000000e+00 : f32
    %3 = vector.broadcast %cst : f32 to vector<8x256xf32>
    %4 = arith.subf %3, %2 : vector<8x256xf32>
    %5 = arith.mulf %0, %4 : vector<8x256xf32>
    %6 = arith.mulf %1, %2 : vector<8x256xf32>
    %7 = arith.addf %5, %6 : vector<8x256xf32>
    %c0_5 = arith.constant 0 : index
    %c0_6 = arith.constant 0 : index
    %8 = vector.load %arg4[%c0_5, %c0_6] : memref<8x256xf32, #tpu.memory_space<vmem>>, vector<8x256xf32>
    tpu.vector_store %arg4[%c0_5, %c0_6], %7 {strides = array<i32>} : memref<8x256xf32, #tpu.memory_space<vmem>>, vector<8x256xf32>,
    return
  }
  func.func @transform_0(%arg0: i32) -> (i32, i32) {
    %c0_i32 = arith.constant 0 : i32
    %c0_i32_0 = arith.constant 0 : i32
    return %arg0, %c0_i32 : i32, i32
  }
  func.func @transform_1(%arg0: i32) -> (i32, i32) {
    %c0_i32 = arith.constant 0 : i32
    %c0_i32_0 = arith.constant 0 : i32
    return %arg0, %c0_i32 : i32, i32
  }
  func.func @transform_2(%arg0: i32) -> (i32, i32) {
    %c0_i32 = arith.constant 0 : i32
    %c0_i32_0 = arith.constant 0 : i32
    return %arg0, %c0_i32 : i32, i32
  }
  func.func @transform_3(%arg0: i32) -> (i32, i32) {
    %c0_i32 = arith.constant 0 : i32
    %c0_i32_0 = arith.constant 0 : i32
    return %arg0, %c0_i32 : i32, i32
  }
}

</mosaic_0001>

<bundles_post_ra>
// kernel: tpu_custom_call.1
= control target key start
LH: loop header
LB: loop body
LE: loop exit
PB: predicated region body
PF: predicated region fallthrough
CT: control target
= control target key end

     0   :  { %8 = vsyncpa [#allocation3], 0  ;;  %s232_s0 = inlined_call_operand.hbm [shape: f32[8,256], index: 0, kind: input, shape index: {}]   ;;  %s233_s1 = inlined_call_operand.hbm [shape: f32[8,256], index: 1, kind: input, shape index: {}]   ;;  %s234_s2 = inlined_call_operand.hbm [shape: f32[8,256], index: 2, kind: input, shape index: {}]   ;;  %s235_s3 = inlined_call_operand.hbm [shape: f32[8,256], index: 3, kind: output, shape index: {}]  }
   0x1   :  { %9 = vsyncpa [#allocation6], 0  ;;  %s27_s14 = sshll.u32 %s233_s1, 4  ;;  %s28_s14 = int_to_ptr.hbm [resolvable:$true] %s27_s14 }
   0x2   :  { %10 = vsyncpa [#allocation4], 0  ;;  %s196_s15 = smov [#allocation5]   ;;  %s16_s19 = sshll.u32 %s232_s0, 4  ;;  %s17_s19 = int_to_ptr.hbm [resolvable:$true] %s16_s19 }
   0x3   :  { %s29_s16 = sshll.u32 %s196_s15, 4  ;;  %s197_s20 = smov [#allocation2]   ;;  %s30_s16 = int_to_ptr.vmem [resolvable:$true] %s29_s16 }
   0x4   :  { %32 = dma.hbm_to_vmem [thread:$0]  %s28_s14, 256, %s30_s16, [#allocation6]  }
   0x5   :  { %s18_s21 = sshll.u32 %s197_s20, 4  ;;  %s38_s24 = sshll.u32 %s234_s2, 4  ;;  %s19_s21 = int_to_ptr.vmem [resolvable:$true] %s18_s21  ;;  %s39_s24 = int_to_ptr.hbm [resolvable:$true] %s38_s24 }
   0x6   :  { %21 = dma.hbm_to_vmem [thread:$0]  %s17_s19, 256, %s19_s21, [#allocation3]  }
   0x7   :  { %s198_s1 = smov [#allocation7]  }
   0x8   :  { %s40_s25 = sshll.u32 %s198_s1, 4  ;;  %s41_s25 = int_to_ptr.vmem [resolvable:$true] %s40_s25 }
   0x9   :  { %43 = dma.hbm_to_vmem [thread:$0]  %s39_s24, 256, %s41_s25, [#allocation6]  }
   0xa   :  { %190 = dma.done.wait [#allocation3], 256  }
   0xb   :  { %191 = vsyncadd [#allocation3], 4294967040 }
   0xc   :  { %192 = dma.done.wait [#allocation6], 512  }
   0xd   :  { %193 = vsyncadd [#allocation6], 4294966784  ;;  %v56_v0 = vld [vmem:[#allocation2] sm:$0xff]  ;;  %v58_v1 = vld [vmem:[#allocation5] sm:$0xff]  ;;  %s199_s0 = smov [#allocation8]   ;;  %s79_s28 = sshll.u32 %s235_s3, 4  ;;  %s80_s28 = int_to_ptr.hbm [resolvable:$true] %s79_s28 }
   0xe   :  { %v60_v2 = vld [vmem:[#allocation7] sm:$0xff]  ;;  %v57_v5 = vld [vmem:[#allocation2 + $0x8] sm:$0xff]  ;;  %v59_v6 = vld [vmem:[#allocation5 + $0x8] sm:$0xff]  ;;  %s77_s2 = sshll.u32 %s199_s0, 4  ;;  %s78_s2 = int_to_ptr.vmem [resolvable:$true] %s77_s2 }
   0xf   :  { %v62_v3 = vsub.f32 1.0, %v60_v2  ;;  %v66_v4 = vmul.f32 %v60_v2, %v58_v1  ;;  %v61_v7 = vld [vmem:[#allocation7 + $0x8] sm:$0xff] }
  0x10   :  { %v63_v8 = vsub.f32 1.0, %v61_v7  ;;  %v67_v9 = vmul.f32 %v61_v7, %v59_v6 }
  0x11   :  { %v64_v10 = vmul.f32 %v62_v3, %v56_v0 }
  0x12   :  { %v65_v11 = vmul.f32 %v63_v8, %v57_v5 }
  0x13   :  { %v68_v12 = vadd.f32 %v66_v4, %v64_v10 }
  0x14   :  { %v69_v13 = vadd.f32 %v67_v9, %v65_v11 }
  0x15   :  { %70 = vst [vmem:[#allocation8] sm:$0xff] %v68_v12 }
  0x16   :  { %71 = vst [vmem:[#allocation8 + $0x8] sm:$0xff] %v69_v13 }
  0x17   :  { %82 = dma.vmem_to_hbm [thread:$0]  %s78_s2, 256, %s80_s28, [#allocation4]  }
  0x18   :  { %194 = dma.done.wait [#allocation4], 256  }
  0x19   :  { %195 = vsyncadd [#allocation4], 4294967040 }
  0x1a   :  { %87 = vsyncpa [#allocation3], 1 }
  0x1b   :  { %88 = vsyncpa [#allocation6], 1 }
  0x1c   :  { %89 = vsyncpa [#allocation4], 1 }

</bundles_post_ra>
